<compile_context>
chip_gen: v6e
topology: v6e:2x2x1
jax: 0.10.0
libtpu: 0.0.40
codegen_flags: <defaults>
</compile_context>

<pallas_src>
import math
import functools

import jax
import jax.numpy as jnp
from jax.experimental import pallas as pl
from jax.experimental.pallas import tpu as pltpu


def _sdpa_kernel(q_ref, k_ref, v_ref, o_ref, m_sc, l_sc, acc_sc, *, scale):
    """One (batch_block, q_tile) output tile, streamed over kv tiles."""
    kv = pl.program_id(2)

    # Initialize the online-softmax accumulators at the first kv tile.
    @pl.when(kv == 0)
    def _():
        m_sc[...] = jnp.full(m_sc.shape, -jnp.inf, dtype=m_sc.dtype)
        l_sc[...] = jnp.zeros(l_sc.shape, dtype=l_sc.dtype)
        acc_sc[...] = jnp.zeros(acc_sc.shape, dtype=acc_sc.dtype)

    # (bb, bq, d) x (bb, bk, d) -> (bb, bq, bk); contraction on the last axis of
    # both operands, so K is never transposed / relaid out.
    s = jnp.einsum('bqd,bkd->bqk', q_ref[...], k_ref[...],
                   preferred_element_type=jnp.float32) * scale

    # Numerically stable online softmax update.
    m_prev = m_sc[...]
    m_new = jnp.maximum(m_prev, s.max(axis=-1, keepdims=True))
    alpha = jnp.exp(m_prev - m_new)                       # rescale of old stats
    p = jnp.exp(s - m_new)                                # (bb, bq, bk)
    l_sc[...] = alpha * l_sc[...] + p.sum(axis=-1, keepdims=True)
    acc_sc[...] = alpha * acc_sc[...] + jnp.einsum(
        'bqk,bkd->bqd', p.astype(v_ref.dtype), v_ref[...],
        preferred_element_type=jnp.float32)
    m_sc[...] = m_new

    # Finalize: normalize with an EUP reciprocal and store the output tile.
    @pl.when(kv == pl.num_programs(2) - 1)
    def _():
        inv_l = pl.reciprocal(l_sc[...], approx=True)
        o_ref[...] = (acc_sc[...] * inv_l).astype(o_ref.dtype)


def _pick_block(n, target=512):
    """Full extent for small/odd sizes; tile at `target` when it divides evenly."""
    return target if (n > target and n % target == 0) else n


def scaled_dot_product_attention(queries, keys, values, *,
                                 block_b=1, block_q=None, block_k=None):
    """queries: (B, nq, d), keys: (B, nk, d), values: (B, nk, dv) -> (B, nq, dv)."""
    B, nq, d = queries.shape
    Bk, nk, dk = keys.shape
    Bv, nkv, dv = values.shape
    assert B == Bk == Bv, 'batch sizes must match'
    assert d == dk, 'query/key feature sizes must match'
    assert nk == nkv, 'the key and value did not have the same token length'

    if block_q is None:
        block_q = _pick_block(nq)
    if block_k is None:
        block_k = _pick_block(nk)
    assert B % block_b == 0 and nq % block_q == 0 and nk % block_k == 0

    grid = (B // block_b, nq // block_q, nk // block_k)
    scale = 1.0 / math.sqrt(d)   # reference scales by sqrt(queries.shape[-1])

    kernel = functools.partial(_sdpa_kernel, scale=scale)

    grid_spec = pltpu.PrefetchScalarGridSpec(
        num_scalar_prefetch=0,
        grid=grid,
        in_specs=[
            pl.BlockSpec((block_b, block_q, d), lambda b, qi, ki: (b, qi, 0)),
            pl.BlockSpec((block_b, block_k, d), lambda b, qi, ki: (b, ki, 0)),
            pl.BlockSpec((block_b, block_k, dv), lambda b, qi, ki: (b, ki, 0)),
        ],
        # Output tile is resident across the kv (reduction) axis.
        out_specs=pl.BlockSpec((block_b, block_q, dv),
                               lambda b, qi, ki: (b, qi, 0)),
        scratch_shapes=[
            pltpu.VMEM((block_b, block_q, 1), jnp.float32),    # running max
            pltpu.VMEM((block_b, block_q, 1), jnp.float32),    # running denom
            pltpu.VMEM((block_b, block_q, dv), jnp.float32),   # running numerator
        ],
    )

    return pl.pallas_call(
        kernel,
        out_shape=jax.ShapeDtypeStruct((B, nq, dv), queries.dtype),
        grid_spec=grid_spec,
        compiler_params=pltpu.CompilerParams(
            dimension_semantics=("parallel", "parallel", "arbitrary")),
    )(queries, keys, values)


def _reference_sdpa(queries, keys, values):
    """Pure-JAX reference mirroring the PyTorch module exactly (dropout is a no-op)."""
    d = queries.shape[-1]
    scores = jnp.einsum('bqd,bkd->bqk', queries, keys) / math.sqrt(d)
    p = jax.nn.softmax(scores, axis=-1)
    return jnp.einsum('bqk,bkd->bqd', p, values)


if __name__ == "__main__":
    B = 2      # batch
    nq = 8     # query tokens
    nk = 8     # key/value tokens
    d = 32     # query/key feature size
    dv = 32    # value feature size

    key = jax.random.PRNGKey(0)
    kq, kk, kv = jax.random.split(key, 3)
    queries = jax.random.normal(kq, (B, nq, d), dtype=jnp.float32)
    keys_in = jax.random.normal(kk, (B, nk, d), dtype=jnp.float32)
    values = jax.random.normal(kv, (B, nk, dv), dtype=jnp.float32)

    out = scaled_dot_product_attention(queries, keys_in, values)
    out = jax.block_until_ready(out)

    ref = _reference_sdpa(queries, keys_in, values)
    assert out.shape == (B, nq, dv)
    # Tolerance loosened vs. 1e-5 because the softmax denominator uses the
    # approximate EUP reciprocal (pl.reciprocal(approx=True)).
    assert jnp.allclose(out, ref, atol=2e-2, rtol=2e-2), "mismatch vs reference"

    print("KERNEL_OK")
</pallas_src>

<mosaic_0001>
module attributes {stable_mosaic.version = 11 : i64} {
  func.func @_sdpa_kernel(%arg0: i32, %arg1: i32, %arg2: i32, %arg3: memref<1x8x32xf32, #tpu.memory_space<vmem>>, %arg4: memref<1x8x32xf32, #tpu.memory_space<vmem>>, %arg5: memref<1x8x32xf32, #tpu.memory_space<vmem>>, %arg6: memref<1x8x32xf32, #tpu.memory_space<vmem>>, %arg7: memref<1x8x1xf32, #tpu.memory_space<vmem>>, %arg8: memref<1x8x1xf32, #tpu.memory_space<vmem>>, %arg9: memref<1x8x32xf32, #tpu.memory_space<vmem>>) attributes {dimension_semantics = [#tpu.dimension_semantics<parallel>, #tpu.dimension_semantics<parallel>, #tpu.dimension_semantics<arbitrary>], iteration_bounds = array<i64: 2, 1, 1>, scalar_prefetch = 0 : i64, scratch_operands = 3 : i64, tpu.core_type = #tpu.core_type<tc>, window_params = [{transform_indices = @transform_0, window_bounds = array<i64: 1, 8, 32>}, {transform_indices = @transform_1, window_bounds = array<i64: 1, 8, 32>}, {transform_indices = @transform_2, window_bounds = array<i64: 1, 8, 32>}, {transform_indices = @transform_3, window_bounds = array<i64: 1, 8, 32>}]} {
    %c0_i32 = arith.constant 0 : i32
    %0 = arith.cmpi eq, %arg2, %c0_i32 : i32
    %1 = arith.extui %0 : i1 to i32
    %c0_i32_0 = arith.constant 0 : i32
    %2 = arith.cmpi ne, %1, %c0_i32_0 : i32
    scf.if %2 {
      %cst_33 = arith.constant 0xFF800000 : f32
      %34 = vector.broadcast %cst_33 : f32 to vector<1x8x1xf32>
      %c0_34 = arith.constant 0 : index
      %c0_35 = arith.constant 0 : index
      %c0_36 = arith.constant 0 : index
      %35 = vector.load %arg7[%c0_34, %c0_35, %c0_36] : memref<1x8x1xf32, #tpu.memory_space<vmem>>, vector<1x8x1xf32>
      tpu.vector_store %arg7[%c0_34, %c0_35, %c0_36], %34 {strides = array<i32>} : memref<1x8x1xf32, #tpu.memory_space<vmem>>, vector<1x8x1xf32>,
      %cst_37 = arith.constant 0.000000e+00 : f32
      %36 = vector.broadcast %cst_37 : f32 to vector<1x8x1xf32>
      %c0_38 = arith.constant 0 : index
      %c0_39 = arith.constant 0 : index
      %c0_40 = arith.constant 0 : index
      %37 = vector.load %arg8[%c0_38, %c0_39, %c0_40] : memref<1x8x1xf32, #tpu.memory_space<vmem>>, vector<1x8x1xf32>
      tpu.vector_store %arg8[%c0_38, %c0_39, %c0_40], %36 {strides = array<i32>} : memref<1x8x1xf32, #tpu.memory_space<vmem>>, vector<1x8x1xf32>,
      %cst_41 = arith.constant 0.000000e+00 : f32
      %38 = vector.broadcast %cst_41 : f32 to vector<1x8x32xf32>
      %c0_42 = arith.constant 0 : index
      %c0_43 = arith.constant 0 : index
      %c0_44 = arith.constant 0 : index
      %39 = vector.load %arg9[%c0_42, %c0_43, %c0_44] : memref<1x8x32xf32, #tpu.memory_space<vmem>>, vector<1x8x32xf32>
      tpu.vector_store %arg9[%c0_42, %c0_43, %c0_44], %38 {strides = array<i32>} : memref<1x8x32xf32, #tpu.memory_space<vmem>>, vector<1x8x32xf32>,
    } else {
    }
    %c0 = arith.constant 0 : index
    %c0_1 = arith.constant 0 : index
    %c0_2 = arith.constant 0 : index
    %3 = vector.load %arg3[%c0, %c0_1, %c0_2] : memref<1x8x32xf32, #tpu.memory_space<vmem>>, vector<1x8x32xf32>
    %c0_3 = arith.constant 0 : index
    %c0_4 = arith.constant 0 : index
    %c0_5 = arith.constant 0 : index
    %4 = vector.load %arg4[%c0_3, %c0_4, %c0_5] : memref<1x8x32xf32, #tpu.memory_space<vmem>>, vector<1x8x32xf32>
    "tpu.trace_start"() <{level = 10 : i32, message = "bqd,bkd->bqk"}> : () -> ()
    %cst = arith.constant dense<0.000000e+00> : vector<1x8x8xf32>
    %5 = tpu.matmul %3, %4, %cst {dimension_numbers = #tpu.dot_dimension_numbers<[2], [2], [1], [1], [0, 0, 0, 1, 1, 1], [0], [0]>} : vector<1x8x32xf32>, vector<1x8x32xf32>, vector<1x8x8xf32> -> vector<1x8x8xf32>
    "tpu.trace_stop"() : () -> ()
    %cst_6 = arith.constant 0.176776692 : f32
    %6 = vector.broadcast %cst_6 : f32 to vector<1x8x8xf32>
    %7 = arith.mulf %5, %6 : vector<1x8x8xf32>
    %c0_7 = arith.constant 0 : index
    %c0_8 = arith.constant 0 : index
    %c0_9 = arith.constant 0 : index
    %8 = vector.load %arg7[%c0_7, %c0_8, %c0_9] : memref<1x8x1xf32, #tpu.memory_space<vmem>>, vector<1x8x1xf32>
    %cst_10 = arith.constant dense<0xFF800000> : vector<1x8xf32>
    %9 = vector.multi_reduction <maximumf>, %7, %cst_10 [2] : vector<1x8x8xf32> to vector<1x8xf32>
    %10 = vector.shape_cast %9 : vector<1x8xf32> to vector<1x8x1xf32>
    %11 = arith.maximumf %8, %10 : vector<1x8x1xf32>
    %12 = arith.subf %8, %11 : vector<1x8x1xf32>
    %13 = math.exp %12 : vector<1x8x1xf32>
    %14 = vector.broadcast %11 : vector<1x8x1xf32> to vector<1x8x8xf32>
    %15 = arith.subf %7, %14 : vector<1x8x8xf32>
    %16 = math.exp %15 : vector<1x8x8xf32>
    %c0_11 = arith.constant 0 : index
    %c0_12 = arith.constant 0 : index
    %c0_13 = arith.constant 0 : index
    %17 = vector.load %arg8[%c0_11, %c0_12, %c0_13] : memref<1x8x1xf32, #tpu.memory_space<vmem>>, vector<1x8x1xf32>
    %18 = arith.mulf %13, %17 : vector<1x8x1xf32>
    %cst_14 = arith.constant dense<0.000000e+00> : vector<1x8xf32>
    %19 = vector.multi_reduction <add>, %16, %cst_14 [2] : vector<1x8x8xf32> to vector<1x8xf32>
    %20 = vector.shape_cast %19 : vector<1x8xf32> to vector<1x8x1xf32>
    %21 = arith.addf %18, %20 : vector<1x8x1xf32>
    %c0_15 = arith.constant 0 : index
    %c0_16 = arith.constant 0 : index
    %c0_17 = arith.constant 0 : index
    %22 = vector.load %arg8[%c0_15, %c0_16, %c0_17] : memref<1x8x1xf32, #tpu.memory_space<vmem>>, vector<1x8x1xf32>
    tpu.vector_store %arg8[%c0_15, %c0_16, %c0_17], %21 {strides = array<i32>} : memref<1x8x1xf32, #tpu.memory_space<vmem>>, vector<1x8x1xf32>,
    %c0_18 = arith.constant 0 : index
    %c0_19 = arith.constant 0 : index
    %c0_20 = arith.constant 0 : index
    %23 = vector.load %arg9[%c0_18, %c0_19, %c0_20] : memref<1x8x32xf32, #tpu.memory_space<vmem>>, vector<1x8x32xf32>
    %24 = vector.broadcast %13 : vector<1x8x1xf32> to vector<1x8x32xf32>
    %25 = arith.mulf %24, %23 : vector<1x8x32xf32>
    %c0_21 = arith.constant 0 : index
    %c0_22 = arith.constant 0 : index
    %c0_23 = arith.constant 0 : index
    %26 = vector.load %arg5[%c0_21, %c0_22, %c0_23] : memref<1x8x32xf32, #tpu.memory_space<vmem>>, vector<1x8x32xf32>
    "tpu.trace_start"() <{level = 10 : i32, message = "bqk,bkd->bqd"}> : () -> ()
    %cst_24 = arith.constant dense<0.000000e+00> : vector<1x8x32xf32>
    %27 = tpu.matmul %16, %26, %cst_24 {dimension_numbers = #tpu.dot_dimension_numbers<[2], [1], [1], [2], [0, 0, 0, 1, 1, 2], [0], [0]>} : vector<1x8x8xf32>, vector<1x8x32xf32>, vector<1x8x32xf32> -> vector<1x8x32xf32>
    "tpu.trace_stop"() : () -> ()
    %28 = arith.addf %25, %27 : vector<1x8x32xf32>
    %c0_25 = arith.constant 0 : index
    %c0_26 = arith.constant 0 : index
    %c0_27 = arith.constant 0 : index
    %29 = vector.load %arg9[%c0_25, %c0_26, %c0_27] : memref<1x8x32xf32, #tpu.memory_space<vmem>>, vector<1x8x32xf32>
    tpu.vector_store %arg9[%c0_25, %c0_26, %c0_27], %28 {strides = array<i32>} : memref<1x8x32xf32, #tpu.memory_space<vmem>>, vector<1x8x32xf32>,
    %c0_28 = arith.constant 0 : index
    %c0_29 = arith.constant 0 : index
    %c0_30 = arith.constant 0 : index
    %30 = vector.load %arg7[%c0_28, %c0_29, %c0_30] : memref<1x8x1xf32, #tpu.memory_space<vmem>>, vector<1x8x1xf32>
    tpu.vector_store %arg7[%c0_28, %c0_29, %c0_30], %11 {strides = array<i32>} : memref<1x8x1xf32, #tpu.memory_space<vmem>>, vector<1x8x1xf32>,
    %c0_i32_31 = arith.constant 0 : i32
    %31 = arith.cmpi eq, %arg2, %c0_i32_31 : i32
    %32 = arith.extui %31 : i1 to i32
    %c0_i32_32 = arith.constant 0 : i32
    %33 = arith.cmpi ne, %32, %c0_i32_32 : i32
    scf.if %33 {
      %c0_33 = arith.constant 0 : index
      %c0_34 = arith.constant 0 : index
      %c0_35 = arith.constant 0 : index
      %34 = vector.load %arg8[%c0_33, %c0_34, %c0_35] : memref<1x8x1xf32, #tpu.memory_space<vmem>>, vector<1x8x1xf32>
      %35 = tpu.reciprocal %34 {approx = true} : vector<1x8x1xf32> -> vector<1x8x1xf32>
      %c0_36 = arith.constant 0 : index
      %c0_37 = arith.constant 0 : index
      %c0_38 = arith.constant 0 : index
      %36 = vector.load %arg9[%c0_36, %c0_37, %c0_38] : memref<1x8x32xf32, #tpu.memory_space<vmem>>, vector<1x8x32xf32>
      %37 = vector.broadcast %35 : vector<1x8x1xf32> to vector<1x8x32xf32>
      %38 = arith.mulf %36, %37 : vector<1x8x32xf32>
      %c0_39 = arith.constant 0 : index
      %c0_40 = arith.constant 0 : index
      %c0_41 = arith.constant 0 : index
      %39 = vector.load %arg6[%c0_39, %c0_40, %c0_41] : memref<1x8x32xf32, #tpu.memory_space<vmem>>, vector<1x8x32xf32>
      tpu.vector_store %arg6[%c0_39, %c0_40, %c0_41], %38 {strides = array<i32>} : memref<1x8x32xf32, #tpu.memory_space<vmem>>, vector<1x8x32xf32>,
    } else {
    }
    return
  }
  func.func @transform_0(%arg0: i32, %arg1: i32, %arg2: i32) -> (i32, i32, i32) {
    %c0_i32 = arith.constant 0 : i32
    %c0_i32_0 = arith.constant 0 : i32
    return %arg0, %arg1, %c0_i32 : i32, i32, i32
  }
  func.func @transform_1(%arg0: i32, %arg1: i32, %arg2: i32) -> (i32, i32, i32) {
    %c0_i32 = arith.constant 0 : i32
    %c0_i32_0 = arith.constant 0 : i32
    return %arg0, %arg2, %c0_i32 : i32, i32, i32
  }
  func.func @transform_2(%arg0: i32, %arg1: i32, %arg2: i32) -> (i32, i32, i32) {
    %c0_i32 = arith.constant 0 : i32
    %c0_i32_0 = arith.constant 0 : i32
    return %arg0, %arg2, %c0_i32 : i32, i32, i32
  }
  func.func @transform_3(%arg0: i32, %arg1: i32, %arg2: i32) -> (i32, i32, i32) {
    %c0_i32 = arith.constant 0 : i32
    %c0_i32_0 = arith.constant 0 : i32
    return %arg0, %arg1, %c0_i32 : i32, i32, i32
  }
}

</mosaic_0001>

<bundles_post_ra>
// kernel: tpu_custom_call.1
= control target key start
LH: loop header
LB: loop body
LE: loop exit
PB: predicated region body
PF: predicated region fallthrough
CT: control target
= control target key end

     0   :  { %s1169_s0 = inlined_call_operand.hbm [shape: f32[2,8,32], index: 0, kind: input, shape index: {}]   ;;  %s1170_s1 = inlined_call_operand.hbm [shape: f32[2,8,32], index: 1, kind: input, shape index: {}]   ;;  %s1171_s2 = inlined_call_operand.hbm [shape: f32[2,8,32], index: 2, kind: input, shape index: {}]   ;;  %s1172_s3 = inlined_call_operand.hbm [shape: f32[2,8,32], index: 3, kind: output, shape index: {}]  }
   0x1   :  { %1176 = sst [smem:[#allocation17_spill]] %s1170_s1 }
   0x2   :  { %8 = vsyncpa [#allocation6], 0 }
   0x3   :  { %10 = vsyncpa [#allocation6 + $0x1], 0 }
   0x4   :  { %11 = vsyncpa [#allocation9], 0 }
   0x5   :  { %13 = vsyncpa [#allocation9 + $0x1], 0 }
   0x6   :  { %14 = vsyncpa [#allocation7], 0 }
   0x7   :  { %16 = vsyncpa [#allocation7 + $0x1], 0  ;;  %s959_s12 = smov 0   ;;  %s961_s13 = smov 0  }
   0x8   :  { %s963_s14 = smov 0   ;;  %s965_s15 = smov 0  }
   0x9   :  { %s967_s16 = smov 0   ;;  %s969_s17 = smov 0  }
   0xa LB: > { %1177 = sst [smem:[#allocation15_spill]] %s925_s16  ;;  %s990_s18 = sadd.s32 4294967295, %s929_s17   ;;  %s929_s17 = sphi %s969_s17, %s22_s17   ;;  %s925_s16 = sphi %s967_s16, %s1189_s16   ;;  %s921_s15 = sphi %s965_s15, %s1188_s15   ;;  %s917_s14 = sphi %s963_s14, %s1192_s14   ;;  %s913_s13 = sphi %s961_s13, %s1191_s13   ;;  %s909_s12 = sphi %s959_s12, %s1190_s12  }
   0xb   : > { %s642_s19 = sadd.s32 4294967294, %s929_s17   ;;  %s41_s20 = sadd.s32 1, %s925_s16 }
   0xc   : > { %s50_s21 = sadd.s32 1, %s917_s14  ;;  %p43_p0 = scmp.ge.s32.totalorder %s41_s20, 2 }
   0xd   : > { %p57_p1 = scmp.ne.s32.totalorder %s917_s14, %s913_s13  ;;  %p58_p2 = scmp.eq.s32.totalorder %s929_s17, 0 }
   0xe   : > { %p63_p3 = scmp.ne.s32.totalorder %s913_s13, %s909_s12  ;;  %s1194_s20 = smov (%p43_p0, %s41_s20), 0 }
   0xf   : > { %1178 = sst [smem:[#allocation16_spill]] %s1194_s20  ;;  %p1002_p4 = por %p58_p2, %p57_p1 }
  0x10   : > { %p64_p5 = scmp.eq.s32.totalorder %s990_s18, 0  ;;  %s45_s23 = ssub.s32 %s925_s16, %s1194_s20 }
  0x11   : > { %p145_p6 = scmp.eq.s32.totalorder %s990_s18, 1  ;;  %p48_p7 = scmp.eq.s32.totalorder %s45_s23, 0 }
  0x12   : > { %p1010_p8 = por %p64_p5, %p63_p3  ;;  %p151_p10 = scmp.eq.s32.totalorder %s642_s19, 1 }
  0x13   : > { %p1014_p9 = por %p145_p6, %p57_p1  ;;  %p699_p13 = scmp.lt.s32.totalorder %s929_s17, 2 }
  0x14   : > { %s1019_s26 = scalar_select %p48_p7, %s917_s14, %s50_s21  }
  0x15   : > { %p1021_p11 = por %p151_p10, %p63_p3  ;;  %s1173_s28 = sand.u32 1, %s917_s14  }
  0x16   : > { %s1030_s29 = sshll.u32 %s1173_s28, 3  ;;  %s1033_s30 = sshll.u32 %s925_s16, 7 }
  0x17   : > { %p1037_p0 = pnand %p699_p13, %p1002_p4  ;;  %s190_s5 = sand.u32 1, %s929_s17  }
  0x18   : > { %s1184_s1 = sld [smem:[#allocation17_spill]]  ;;  %s194_s9 = scalar_lea.vmem [#allocation8], %s1030_s29 }
  0x19   : > { %s202_s10 = sshll.u32 %s194_s9, 4  ;;  %p651_p1 = scmp.ge.s32.totalorder %s929_s17, 1  ;;  %s203_s10 = int_to_ptr.vmem [resolvable:$true] %s202_s10 }
  0x1a   : > { %p226_p2 = scmp.lt.s32.totalorder %s929_s17, 3  ;;  %s1049_s11 = scalar_lea.sflag [#allocation9], %s190_s5 }
  0x1b   : > { %p763_p3 = pneg %p1037_p0  ;;  %s774_s19 = scalar_lea.vmem %s203_s10, 128 }
  0x1c   : > { %p775_p4 = scmp.ne.s32.totalorder %s203_s10, %s774_s19  ;;  %s931_s21 = smov [#allocation8]  }
  0x1d   : > { %s779_s22 = sshll.u32 %s931_s21, 4  ;;  %s780_s22 = int_to_ptr.vmem [resolvable:$false] %s779_s22 }
  0x1e   : > { %s200_s8 = scalar_lea.hbm %s1184_s1, %s1033_s30  ;;  %p777_p5 = pnand %p775_p4, %p763_p3 }
  0x1f   : > { %s781_s23 = scalar_lea.vmem %s780_s22, 256  ;;  %p782_p7 = scmp.lt.s32.totalorder %s203_s10, %s780_s22 }
  0x20   : > { %p778_p6 = pneg %p777_p5  ;;  %p783_p10 = scmp.lt.s32.totalorder %s781_s23, %s774_s19 }
  0x22   : > { %p784_p13 = por %p783_p10, %p782_p7 }
  0x24   : > { %p785_p12 = pnand %p784_p13, %p778_p6 }
  0x26   : > { %788 = shalt.err (!%p785_p12)
}
  0x27   : > { %691 = dma.hbm_to_vmem [thread:$0]  (!%p1037_p0), %s200_s8, 128, %s203_s10, %s1049_s11  }
  0x28   : > { %p1063_p4 = pnand %p651_p1, %p226_p2  ;;  %s181_s9 = scalar_lea.hbm %s1169_s0, %s1033_s30 }
  0x29   : > { %s175_s19 = scalar_lea.vmem [#allocation5], %s1030_s29  ;;  %s219_s28 = scalar_lea.hbm %s1171_s2, %s1033_s30 }
  0x2a   : > { %s183_s21 = sshll.u32 %s175_s19, 4  ;;  %s1186_s1 = sand.u32 1, %s917_s14   ;;  %s184_s21 = int_to_ptr.vmem [resolvable:$true] %s183_s21 }
  0x2b   : > { %s172_s20 = scalar_lea.sflag [#allocation6], %s1186_s1  ;;  %s802_s8 = scalar_lea.vmem %s184_s21, 128 }
  0x2c   : > { %p803_p12 = scmp.ne.s32.totalorder %s184_s21, %s802_s8  ;;  %s932_s10 = smov [#allocation5]  }
  0x2d   : > { %s807_s16 = sshll.u32 %s932_s10, 4  ;;  %s808_s16 = int_to_ptr.vmem [resolvable:$false] %s807_s16 }
  0x2e   : > { %p805_p1 = pnand %p803_p12, %p763_p3  ;;  %s809_s6 = scalar_lea.vmem %s808_s16, 256 }
  0x2f   : > { %p810_p5 = scmp.lt.s32.totalorder %s184_s21, %s808_s16  ;;  %p811_p6 = scmp.lt.s32.totalorder %s809_s6, %s802_s8 }
  0x30   : > { %p806_p2 = pneg %p805_p1 }
  0x31   : > { %p812_p7 = por %p811_p6, %p810_p5 }
  0x33   : > { %p813_p10 = pnand %p812_p7, %p806_p2 }
  0x35   : > { %816 = shalt.err (!%p813_p10)
}
  0x36   : > { %688 = dma.hbm_to_vmem [thread:$0]  (!%p1037_p0), %s181_s9, 128, %s184_s21, %s172_s20  }
  0x37   : > { %s213_s1 = scalar_lea.vmem [#allocation10], %s1030_s29  ;;  %s933_s22 = smov [#allocation10]  }
  0x38   : > { %s221_s7 = sshll.u32 %s213_s1, 4  ;;  %s835_s16 = sshll.u32 %s933_s22, 4  ;;  %s222_s7 = int_to_ptr.vmem [resolvable:$true] %s221_s7  ;;  %s836_s16 = int_to_ptr.vmem [resolvable:$false] %s835_s16 }
  0x39   : > { %s830_s19 = scalar_lea.vmem %s222_s7, 128  ;;  %s837_s23 = scalar_lea.vmem %s836_s16, 256 }
  0x3a   : > { %p831_p13 = scmp.ne.s32.totalorder %s222_s7, %s830_s19  ;;  %p838_p2 = scmp.lt.s32.totalorder %s222_s7, %s836_s16 }
  0x3b   : > { %p839_p5 = scmp.lt.s32.totalorder %s837_s23, %s830_s19 }
  0x3c   : > { %p833_p12 = pnand %p831_p13, %p763_p3 }
  0x3d   : > { %p840_p6 = por %p839_p5, %p838_p2 }
  0x3e   : > { %p834_p1 = pneg %p833_p12 }
  0x40   : > { %p841_p7 = pnand %p840_p6, %p834_p1 }
  0x42   : > { %844 = shalt.err (!%p841_p7)
}
  0x43   : > { %694 = dma.hbm_to_vmem [thread:$0]  (!%p1037_p0), %s219_s28, 128, %s222_s7, %s1049_s11  }
  0x44   : > { %230 = sbr.rel (%p1063_p4) target bundleno = 863 (0x35f), region = 32  ;;  %s1098_s9 = sand.u32 (!%p1063_p4), 1, %s913_s13  }
  0x45   : > { %s1101_s21 = sshll.u32 (!%p1063_p4), %s1098_s9, 3  ;;  %s233_s4 = scalar_lea.sflag (!%p1063_p4), [#allocation6], %s1098_s9 }
  0x46   : > { %s236_s8 = scalar_lea.vmem (!%p1063_p4), [#allocation5], %s1101_s21 }
  0x49   : > { %896 = dma.done.wait (%p1010_p8), %s233_s4, 128  }
  0x4a   : > { %898 = vsyncadd (%p1010_p8), %s233_s4, 4294967168  ;;  %s241_s28 = sand.u32 1, %s990_s18   ;;  %s245_s11 = scalar_lea.vmem [#allocation8], %s1101_s21 }
  0x4b   : > { %s242_s30 = scalar_lea.sflag [#allocation9], %s241_s28 }
  0x4c   : > { %900 = dma.done.wait (%p1010_p8), %s242_s30, 256  }
  0x4d   : > { %902 = vsyncadd (%p1010_p8), %s242_s30, 4294967040  ;;  %vm294_vm0 = vcmask 261120   ;;  %v934_v0 = vmov 0.0   ;;  %vm935_vm1 = vmmov 0   ;;  %v297_v1 = vld [vmem:[%s245_s11] sm:$0xff]  ;;  %v296_v2 = vld [vmem:[%s236_s8] sm:$0xff] }
  0x4e   : > { %667 = vmatprep.subr.mxu0 %v934_v0  ;;  %295 = vst.msk [vmem:[#allocation4] sm:$0xff] %vm294_vm0, %v934_v0  ;;  %669 = vmatprep.mubr.msk.f32.mxu0 %vm935_vm1, %v934_v0  ;;  %vm291_vm2 = vcmask 7168   ;;  %v936_v3 = vmov -inf   ;;  %vm377_vm3 = vcmask 64512   ;;  %v937_v8 = vmov 0   ;;  %s254_s18 = scalar_lea.vmem [#allocation10], %s1101_s21 }
  0x4f   : > { %672 = vmatprep.subr.mxu1 %v934_v0  ;;  %674 = vmatprep.mubr.msk.f32.mxu1 %vm935_vm1, %v934_v0  ;;  %292 = vst.msk [vmem:[#allocation2] sm:$0xff] %vm291_vm2, %v936_v3  ;;  %293 = vst.msk [vmem:[#allocation3] sm:$0xff] %vm291_vm2, %v934_v0  ;;  %v408_v13 = vld [vmem:[%s254_s18] sm:$0xff]  ;;  %s660_s24 = sshll.u32 %s921_s15, 7  ;;  %s286_s5 = scalar_lea.vmem [#allocation11], %s1101_s21 }
  0x50   : > { %668 = vmatpush3.xpose.msk.msra.mxu0 %vm294_vm0, %v297_v1  ;;  %753 = vset.pattern.permute.xlu0 %v937_v8  ;;  %s513_s10 = sshll.u32 %s286_s5, 4  ;;  %s511_s7 = scalar_lea.hbm %s1172_s3, %s660_s24  ;;  %s514_s10 = int_to_ptr.vmem [resolvable:$true] %s513_s10 }
  0x51   : > { %754 = vset.pattern.permute.xlu1 %v937_v8  ;;  %673 = vmatpush3.msra.mxu1 %v408_v13  ;;  %s499_s19 = scalar_lea.sflag [#allocation7], %s1098_s9  ;;  %s845_s22 = scalar_lea.vmem %s514_s10, 128 }
  0x52   : > { %p846_p8 = scmp.ne.s32.totalorder %s514_s10, %s845_s22  ;;  %s938_s16 = smov [#allocation11]  }
  0x53   : > { %670 = vmatmul.mubr.msk.f32.vlgmr.msra.gmra.mxu0 %vm294_vm0, %v296_v2  ;;  %s849_s15 = sshll.u32 %s938_s16, 4  ;;  %s850_s15 = int_to_ptr.vmem [resolvable:$false] %s849_s15 }
  0x54   : > { %p847_p0 = pnand %p846_p8, %p1014_p9  ;;  %s851_s23 = scalar_lea.vmem %s850_s15, 256 }
  0x55   : > { %v401_v27 = vld [vmem:[#allocation4] sm:$0xff]  ;;  %p852_p4 = scmp.lt.s32.totalorder %s514_s10, %s850_s15  ;;  %p853_p10 = scmp.lt.s32.totalorder %s851_s23, %s845_s22 }
  0x56   : > { %v376_v9 = vld [vmem:[#allocation2] sm:$0xff]  ;;  %v393_v21 = vld [vmem:[#allocation3] sm:$0xff]  ;;  %p848_p3 = pneg %p847_p0 }
  0x57   : > { %p854_p13 = por %p853_p10, %p852_p4 }
  0x59   : > { %p855_p12 = pnand %p854_p13, %p848_p3 }
 0x113   : > { %v371_v4 = vpop.f32.mrf.mxu0 }
 0x114   : > { %v375_v5 = vmul.f32 0.17677669, %v371_v4 }
 0x115   : > { %v671_v6 = vpop.f32.mrf.mxu0 }
 0x116   : > { %v378_v7 = vsel %vm377_vm3, %v375_v5, -inf }
 0x117   : > { %379 = vmax.xlane.f32.xlu0 %v378_v7 }
 0x1a0   : > { %v380_v10 = vpop.xlane.xlu0 %379 }
 0x1a1   : > { %v381_v11 = vmax.f32 %v376_v9, %v380_v10 }
 0x1a3   : > { %v382_v12 = vsub.f32 %v376_v9, %v381_v11  ;;  %484 = vst.msk [vmem:[#allocation2] sm:$0xff] %vm291_vm2, %v381_v11  ;;  %387 = vperm.xlu0 %753, %v381_v11  }
 0x1a5   : > { %v383_v18 = vmul.f32 1.442695, %v382_v12 }
 0x21e   : > { %v388_v14 = vpop.permute.xlu0 %387 }
 0x21f   : > { %v390_v15 = vsub.f32 %v375_v5, %v388_v14 }
 0x221   : > { %v391_v16 = vmul.f32 1.442695, %v390_v15 }
 0x223   : > { %755 = vpow2.f32 %v391_v16 }
 0x224   : > { %757 = vpow2.f32 %v383_v18 }
 0x230   : > { %v756_v17 = vpop.eup %755 }
 0x231   : > { %675 = vmatmul.mubr.msk.f32.vlgmr.msra.gmra.mxu1 %vm377_vm3, %v756_v17  ;;  %v395_v19 = vsel %vm377_vm3, %v756_v17, 0.0  ;;  %v758_v20 = vpop.eup %757 }
 0x232   : > { %396 = vadd.xlane.f32.xlu1 %v395_v19  ;;  %v394_v22 = vmul.f32 %v758_v20, %v393_v21 }
 0x243   : > { %404 = vperm.xlu1 %754, %v758_v20  }
 0x2bb   : > { %v397_v23 = vpop.xlane.xlu1 %396 }
 0x2bc   : > { %v398_v24 = vadd.f32 %v397_v23, %v394_v22 }
 0x2be   : > { %400 = vst.msk [vmem:[#allocation3] sm:$0xff] %vm291_vm2, %v398_v24 }
 0x2bf   : > { %v405_v28 = vpop.permute.xlu1 %404 }
 0x2c0   : > { %v407_v29 = vmul.f32 %v405_v28, %v401_v27 }
 0x2c5   : > { %v488_v25 = vld [vmem:[#allocation3] sm:$0xff] }
 0x2c6   : > { %759 = vrcp.f32 %v488_v25 }
 0x2d3   : > { %v760_v26 = vpop.eup %759 }
 0x2d4   : > { %493 = vperm.xlu1 %754, %v760_v26  }
 0x2f1   : > { %v478_v30 = vpop.f32.mrf.mxu1 }
 0x2f2   : > { %v482_v31 = vadd.f32 %v478_v30, %v407_v29 }
 0x2f3   : > { %v676_v32 = vpop.f32.mrf.mxu1 }
 0x2f4   : > { %483 = vst.msk [vmem:[#allocation4] sm:$0xff] %vm294_vm0, %v482_v31 }
 0x2fb   : > { %v490_v33 = vld [vmem:[#allocation4] sm:$0xff] }
 0x34f   : > { %v494_v34 = vpop.permute.xlu1 %493 }
 0x350   : > { %v496_v35 = vmul.f32 %v494_v34, %v490_v33 }
 0x352   : > { %497 = vst.msk [vmem:[%s286_s5] sm:$0xff] %vm294_vm0, %v496_v35 }
 0x353   : > { %858 = shalt.err (!%p855_p12)
}
 0x354   : > { %s859_s20 = scalar_lea.hbm %s511_s7, 128  ;;  %s863_s21 = scalar_lea.hbm %s1172_s3, 256 }
 0x355   : > { %p860_p1 = scmp.ne.s32.totalorder %s511_s7, %s859_s20  ;;  %p864_p6 = scmp.lt.s32.totalorder %s511_s7, %s1172_s3 }
 0x356   : > { %p865_p7 = scmp.lt.s32.totalorder %s863_s21, %s859_s20 }
 0x357   : > { %p861_p2 = pnand %p860_p1, %p1014_p9 }
 0x358   : > { %p866_p8 = por %p865_p7, %p864_p6 }
 0x359   : > { %p862_p5 = pneg %p861_p2 }
 0x35b   : > { %p867_p0 = pnand %p866_p8, %p862_p5 }
 0x35d   : > { %870 = shalt.err (!%p867_p0)
}
 0x35e   : > { %683 = dma.vmem_to_hbm [thread:$0]  (%p1014_p9), %s514_s10, 128, %s511_s7, %s499_s19  }
 0x35f PF: > { %s525_s28 = sand.u32 1, %s909_s12   ;;  %p1187_p3 = scmp.ge.s32.totalorder %s929_s17, 2 }
 0x360   : > { %s526_s30 = scalar_lea.sflag [#allocation7], %s525_s28 }
 0x361   : > { %p696_p4 = pnand %p1187_p3, %p1021_p11 }
 0x363   : > { %p697_p10 = pneg %p696_p4 }
 0x365   : > { %904 = dma.done.wait (%p697_p10), %s526_s30, 128  }
 0x366   : > { %906 = vsyncadd (%p697_p10), %s526_s30, 4294967168  ;;  %s22_s17 = sadd.s32 1, %s929_s17   ;;  %s1188_s15 = sld [smem:[#allocation15_spill]] }
 0x367   : > { %p19_p13 = scmp.ge.s32.totalorder %s22_s17, 4   ;;  %s1189_s16 = sld [smem:[#allocation16_spill]] }
 0x368   : > { %s1190_s12 = smov %s913_s13  ;;  %s1191_s13 = smov %s917_s14 }
 0x369   : > { %s1192_s14 = smov %s1019_s26  ;;  %21 = sbr.rel (!%p19_p13) target bundleno = 10 (0xa), region = 109 }
 0x36e   :  { %531 = vsyncpa [#allocation6], 1 }
 0x36f   :  { %533 = vsyncpa [#allocation6 + $0x1], 1 }
 0x370   :  { %534 = vsyncpa [#allocation9], 1 }
 0x371   :  { %536 = vsyncpa [#allocation9 + $0x1], 1 }
 0x372   :  { %537 = vsyncpa [#allocation7], 1 }
 0x373   :  { %539 = vsyncpa [#allocation7 + $0x1], 1 }

</bundles_post_ra>
